<compile_context>
chip_gen: v7x
topology: tpu7x:2x2x1
jax: 0.10.0
libtpu: 0.0.40
codegen_flags: <defaults>
</compile_context>

<pallas_src>
import functools
import math

import jax
import jax.numpy as jnp
from jax.experimental import pallas as pl
from jax.experimental.pallas import tpu as pltpu

_INV_SQRT2 = 1.0 / math.sqrt(2.0)


def _gelu(x, approx):
    if approx:
        return jax.nn.gelu(x, approximate=True)                 # tanh -> EUP slot
    return 0.5 * x * (1.0 + jax.lax.erf(x * _INV_SQRT2))        # exact (PyTorch nn.GELU())


def _depthwise_conv_gelu(xm, left, right, w_ref, b_ref, out_ref, post_mask, *,
                         kernel_size, pad, halo, gelu_approx):
    """Shared body. xm: (TN,TC) f32 pre-masked tile; left/right: (halo,TC) f32 gated halos."""
    TN = out_ref.shape[1]
    TC = out_ref.shape[2]
    T = TN + 2 * halo

    # Haloed window assembled from quantum-aligned pieces (no unaligned scratch stores).
    win = jnp.concatenate([left, xm, right], axis=0)             # (T, TC) f32

    w = w_ref[...].astype(jnp.float32)                           # (K, TC), hoisted
    b = b_ref[...].astype(jnp.float32)                           # (1, TC)

    acc = jnp.zeros((TN, TC), jnp.float32)
    for k in range(kernel_size):                                 # static -> fully unrolled
        o = halo - pad + k                                       # window row offset of tap k
        if o % 8 == 0:
            shifted = win[o:o + TN]                              # sublane-aligned static slice
        else:
            # Sublane rotation on the XLU instead of an unaligned (double-load + select) read.
            shifted = pltpu.roll(win, (T - o) % T, axis=0)[:TN]
        acc = acc + shifted * w[k:k + 1, :]
    acc = acc + b

    y = _gelu(acc, gelu_approx)
    if post_mask is not None:
        y = y * post_mask                                        # masked_fill(~mask, 0) post-conv
    out_ref[0] = y.astype(out_ref.dtype)


def _kernel_nomask(x_ref, xl_ref, xr_ref, w_ref, b_ref, out_ref, *,
                   kernel_size, pad, halo, gelu_approx):
    j = pl.program_id(1)
    nseq = pl.num_programs(1)
    xm = x_ref[0].astype(jnp.float32)
    left = jnp.where(j > 0, xl_ref[0].astype(jnp.float32), 0.0)
    right = jnp.where(j < nseq - 1, xr_ref[0].astype(jnp.float32), 0.0)
    _depthwise_conv_gelu(xm, left, right, w_ref, b_ref, out_ref, None,
                         kernel_size=kernel_size, pad=pad, halo=halo,
                         gelu_approx=gelu_approx)


def _kernel_masked(x_ref, xl_ref, xr_ref, m_ref, ml_ref, mr_ref, w_ref, b_ref, out_ref, *,
                   kernel_size, pad, halo, gelu_approx):
    j = pl.program_id(1)
    nseq = pl.num_programs(1)
    mf = m_ref[0].astype(jnp.float32)                            # (TN, 1)
    xm = x_ref[0].astype(jnp.float32) * mf                       # pre-mask before conv
    left = jnp.where(j > 0,
                     xl_ref[0].astype(jnp.float32) * ml_ref[0].astype(jnp.float32), 0.0)
    right = jnp.where(j < nseq - 1,
                      xr_ref[0].astype(jnp.float32) * mr_ref[0].astype(jnp.float32), 0.0)
    _depthwise_conv_gelu(xm, left, right, w_ref, b_ref, out_ref, mf,
                         kernel_size=kernel_size, pad=pad, halo=halo,
                         gelu_approx=gelu_approx)


def _choose_seq_tile(n, halo, target):
    """Seq tile: multiple of `halo`, <= max(target, halo); minimizes padded traffic so
    awkward N never degrades to tiny tiles (pads N up instead)."""
    cap = max(halo, (target // halo) * halo)
    n_min = halo * pl.cdiv(n, halo)
    best_t, best_cost = halo, None
    t = halo
    while t <= min(cap, n_min):
        padded = t * pl.cdiv(n, t)
        # bytes moved (with padding) + halo over-fetch + per-step pipeline overhead (~rows)
        cost = padded * (1.0 + (2 * halo + 32) / t)
        if best_cost is None or cost < best_cost:
            best_t, best_cost = t, cost
        t += halo
    return best_t


def _choose_chan_tile(c, target):
    if c % 128 != 0:
        return c
    cap = max(128, (target // 128) * 128)
    best = 128
    t = 128
    while t <= min(c, cap):
        if c % t == 0:
            best = t
        t += 128
    return best


def conv_position_embed(x, weight, bias, mask=None, *, seq_tile=1024, chan_tile=512,
                        gelu_approx=False):
    """ConvPositionEmbed forward.

    x:      (B, N, C)
    weight: (C, 1, K)   PyTorch depthwise Conv1d weight layout
    bias:   (C,)
    mask:   (B, N) bool or None
    returns (B, N, C)
    """
    B, N, C = x.shape
    Cw, one, K = weight.shape
    assert Cw == C and one == 1, "expected depthwise Conv1d weight of shape (C, 1, K)"
    assert K % 2 == 1, "kernel_size must be odd so padding=K//2 preserves seq length"
    pad = K // 2

    itemsize = jnp.dtype(x.dtype).itemsize
    # dtype-aware sublane packing quantum: f32 -> 8, bf16 -> 16, int8/fp8 -> 32
    quantum = {4: 8, 2: 16, 1: 32}.get(itemsize, 8)
    halo = quantum * pl.cdiv(max(pad, 1), quantum)               # aligned halo height >= pad

    TN = _choose_seq_tile(N, halo, seq_tile)
    TC = _choose_chan_tile(C, chan_tile)

    n_orig = N
    Np = TN * pl.cdiv(N, TN)
    if Np != n_orig:
        # Zero rows past N behave exactly like the conv's own zero padding; sliced off below.
        x = jnp.pad(x, ((0, 0), (0, Np - n_orig), (0, 0)))

    masked = mask is not None
    if masked:
        m = mask.astype(x.dtype).reshape(B, n_orig, 1)
        if Np != n_orig:
            m = jnp.pad(m, ((0, 0), (0, Np - n_orig), (0, 0)))

    # Depthwise weight (C, 1, K) -> (K, C): tap k is one channel row.
    w_kc = jnp.transpose(weight[:, 0, :], (1, 0))
    b_1c = bias.reshape(1, C)

    r = TN // halo                       # halo-sized blocks per seq tile
    n_halo_blk = Np // halo
    grid = (B, Np // TN, C // TC)

    x_main = pl.BlockSpec((1, TN, TC), lambda b, j, c: (b, j, c))
    x_left = pl.BlockSpec((1, halo, TC),
                          lambda b, j, c: (b, jnp.maximum(j * r - 1, 0), c))
    x_right = pl.BlockSpec((1, halo, TC),
                           lambda b, j, c: (b, jnp.minimum((j + 1) * r, n_halo_blk - 1), c))
    w_spec = pl.BlockSpec((K, TC), lambda b, j, c: (0, c))
    b_spec = pl.BlockSpec((1, TC), lambda b, j, c: (0, c))
    out_spec = pl.BlockSpec((1, TN, TC), lambda b, j, c: (b, j, c))

    kern_kwargs = dict(kernel_size=K, pad=pad, halo=halo, gelu_approx=gelu_approx)
    if masked:
        m_main = pl.BlockSpec((1, TN, 1), lambda b, j, c: (b, j, 0))
        m_left = pl.BlockSpec((1, halo, 1),
                              lambda b, j, c: (b, jnp.maximum(j * r - 1, 0), 0))
        m_right = pl.BlockSpec((1, halo, 1),
                               lambda b, j, c: (b, jnp.minimum((j + 1) * r, n_halo_blk - 1), 0))
        kernel = functools.partial(_kernel_masked, **kern_kwargs)
        in_specs = [x_main, x_left, x_right, m_main, m_left, m_right, w_spec, b_spec]
        args = (x, x, x, m, m, m, w_kc, b_1c)
    else:
        kernel = functools.partial(_kernel_nomask, **kern_kwargs)
        in_specs = [x_main, x_left, x_right, w_spec, b_spec]
        args = (x, x, x, w_kc, b_1c)

    # Rough per-step VMEM footprint -> explicit scoped-VMEM limit (v5e default is 16 MiB);
    # capped at 48 MiB to stay safe on v7x (64 MiB physical VMEM).
    f32b = 4
    blk = TN * TC * itemsize
    halo_blk = halo * TC * itemsize
    mask_blk = (TN + 2 * halo) * 128 * itemsize if masked else 0
    win_bytes = (TN + 2 * halo) * TC * f32b
    est = 2 * (2 * blk + 2 * halo_blk + mask_blk) + (K + 8) * TC * f32b + 4 * win_bytes
    vmem_limit = int(min(max(32 * 1024 * 1024, 2 * est), 48 * 1024 * 1024))

    cost = pl.CostEstimate(
        flops=2 * K * B * Np * C,
        transcendentals=B * Np * C,
        bytes_accessed=(2 * B * Np * C + (B * Np if masked else 0)) * itemsize
                       + (K + 1) * C * f32b,
    )

    out = pl.pallas_call(
        kernel,
        out_shape=jax.ShapeDtypeStruct((B, Np, C), x.dtype),
        grid_spec=pltpu.PrefetchScalarGridSpec(
            num_scalar_prefetch=0,
            grid=grid,
            in_specs=in_specs,
            out_specs=out_spec,
        ),
        compiler_params=pltpu.CompilerParams(
            dimension_semantics=("parallel", "parallel", "parallel"),
            vmem_limit_bytes=vmem_limit,
        ),
        cost_estimate=cost,
    )(*args)

    if Np != n_orig:
        out = out[:, :n_orig]
    return out


def _reference(x, weight, bias, mask=None, gelu_approx=False):
    """Pure-JAX reference mirroring the PyTorch module (f32 math)."""
    x = x.astype(jnp.float32)
    if mask is not None:
        x = jnp.where(mask[..., None], x, 0.0)
    xt = jnp.transpose(x, (0, 2, 1))                             # b n c -> b c n
    pad = weight.shape[-1] // 2
    y = jax.lax.conv_general_dilated(
        xt, weight.astype(jnp.float32), window_strides=(1,), padding=((pad, pad),),
        dimension_numbers=("NCH", "OIH", "NCH"),
        feature_group_count=xt.shape[1],
    ) + bias.astype(jnp.float32)[None, :, None]
    y = _gelu(y, gelu_approx)
    out = jnp.transpose(y, (0, 2, 1))
    if mask is not None:
        out = jnp.where(mask[..., None], out, 0.0)
    return out


if __name__ == "__main__":
    key = jax.random.PRNGKey(0)

    def _params(kw, kb, C, K):
        bound = 1.0 / math.sqrt(K)   # depthwise: (in_channels/groups) * K = K
        w = jax.random.uniform(kw, (C, 1, K), minval=-bound, maxval=bound, dtype=jnp.float32)
        b = jax.random.uniform(kb, (C,), minval=-bound, maxval=bound, dtype=jnp.float32)
        return w, b

    def _check(out, ref, atol, tag):
        err = float(jnp.max(jnp.abs(out.astype(jnp.float32) - ref.astype(jnp.float32))))
        assert err <= atol, f"{tag}: max abs err {err}"

    # 1) several seq tiles per batch (halo + roll path), masked, exact GELU.
    B, N, C, K = 2, 32, 128, 5
    k1, k2, k3, k4, key = jax.random.split(key, 5)
    x = jax.random.normal(k1, (B, N, C), dtype=jnp.float32)
    w, b = _params(k2, k3, C, K)
    mask = jax.random.bernoulli(k4, 0.8, (B, N))
    out = jax.block_until_ready(conv_position_embed(x, w, b, mask, seq_tile=8))
    assert out.shape == (B, N, C)
    _check(out, _reference(x, w, b, mask), 1e-5, "masked/tiled")

    # 2) specialized no-mask kernel, default tiles (single seq tile).
    out2 = jax.block_until_ready(conv_position_embed(x, w, b, None))
    _check(out2, _reference(x, w, b, None), 1e-5, "nomask")

    # 3) channel tiling exercised (C=256 -> two 128-lane channel tiles), K=3.
    Bc, Nc, Cc, Kc = 1, 16, 256, 3
    k1, k2, k3, k4, key = jax.random.split(key, 5)
    xc = jax.random.normal(k1, (Bc, Nc, Cc), dtype=jnp.float32)
    wc, bc = _params(k2, k3, Cc, Kc)
    mc = jax.random.bernoulli(k4, 0.7, (Bc, Nc))
    out3 = jax.block_until_ready(conv_position_embed(xc, wc, bc, mc, seq_tile=8, chan_tile=128))
    _check(out3, _reference(xc, wc, bc, mc), 1e-5, "chan-tiled")

    # 4) awkward N=30: internal pad to a multiple of the seq tile, masked and unmasked.
    Ba, Na, Ca, Ka = 2, 30, 128, 5
    k1, k2, k3, k4, key = jax.random.split(key, 5)
    xa = jax.random.normal(k1, (Ba, Na, Ca), dtype=jnp.float32)
    wa, ba = _params(k2, k3, Ca, Ka)
    ma = jax.random.bernoulli(k4, 0.75, (Ba, Na))
    out4 = jax.block_until_ready(conv_position_embed(xa, wa, ba, ma, seq_tile=16))
    _check(out4, _reference(xa, wa, ba, ma), 1e-5, "awkward-N masked")
    out4b = jax.block_until_ready(conv_position_embed(xa, wa, ba, None, seq_tile=16))
    _check(out4b, _reference(xa, wa, ba, None), 1e-5, "awkward-N nomask")

    # 5) larger kernel K=17 (pad=8): exercises aligned-slice taps (o=0,8,16) and rolled taps.
    Bk, Nk, Ck, Kk = 1, 32, 128, 17
    k1, k2, k3, k4, key = jax.random.split(key, 5)
    xk = jax.random.normal(k1, (Bk, Nk, Ck), dtype=jnp.float32)
    wk, bk = _params(k2, k3, Ck, Kk)
    mk = jax.random.bernoulli(k4, 0.8, (Bk, Nk))
    out5 = jax.block_until_ready(conv_position_embed(xk, wk, bk, mk, seq_tile=16))
    _check(out5, _reference(xk, wk, bk, mk), 1e-5, "K=17")

    # 6) bf16 inputs: dtype-aware 16-row sublane quantum / halo blocks, masked.
    Bf, Nf, Cf, Kf = 2, 48, 128, 5
    k1, k2, k3, k4, key = jax.random.split(key, 5)
    xf = jax.random.normal(k1, (Bf, Nf, Cf), dtype=jnp.bfloat16)
    wf, bf = _params(k2, k3, Cf, Kf)
    mf = jax.random.bernoulli(k4, 0.8, (Bf, Nf))
    out6 = jax.block_until_ready(conv_position_embed(xf, wf, bf, mf, seq_tile=16))
    _check(out6, _reference(xf, wf, bf, mf), 5e-2, "bf16")

    # 7) tanh-approx GELU flag (EUP path), same tensors as case 1.
    out7 = jax.block_until_ready(
        conv_position_embed(x, w, b, mask, seq_tile=8, gelu_approx=True))
    _check(out7, _reference(x, w, b, mask, gelu_approx=True), 1e-5, "gelu-approx")

    print("KERNEL_OK")
</pallas_src>

<mosaic_0001>
module attributes {stable_mosaic.version = 11 : i64} {
  func.func @_kernel_masked(%arg0: i32, %arg1: i32, %arg2: i32, %arg3: memref<1x8x128xf32, #tpu.memory_space<vmem>>, %arg4: memref<1x8x128xf32, #tpu.memory_space<vmem>>, %arg5: memref<1x8x128xf32, #tpu.memory_space<vmem>>, %arg6: memref<1x8x1xf32, #tpu.memory_space<vmem>>, %arg7: memref<1x8x1xf32, #tpu.memory_space<vmem>>, %arg8: memref<1x8x1xf32, #tpu.memory_space<vmem>>, %arg9: memref<5x128xf32, #tpu.memory_space<vmem>>, %arg10: memref<1x128xf32, #tpu.memory_space<vmem>>, %arg11: memref<1x8x128xf32, #tpu.memory_space<vmem>>) attributes {dimension_semantics = [#tpu.dimension_semantics<parallel>, #tpu.dimension_semantics<parallel>, #tpu.dimension_semantics<parallel>], iteration_bounds = array<i64: 2, 4, 1>, scalar_prefetch = 0 : i64, scratch_operands = 0 : i64, tpu.core_type = #tpu.core_type<tc>, window_params = [{transform_indices = @transform_0, window_bounds = array<i64: 1, 8, 128>}, {transform_indices = @transform_1, window_bounds = array<i64: 1, 8, 128>}, {transform_indices = @transform_2, window_bounds = array<i64: 1, 8, 128>}, {transform_indices = @transform_3, window_bounds = array<i64: 1, 8, 1>}, {transform_indices = @transform_4, window_bounds = array<i64: 1, 8, 1>}, {transform_indices = @transform_5, window_bounds = array<i64: 1, 8, 1>}, {transform_indices = @transform_6, window_bounds = array<i64: 5, 128>}, {transform_indices = @transform_7, window_bounds = array<i64: 1, 128>}, {transform_indices = @transform_8, window_bounds = array<i64: 1, 8, 128>}]} {
    %c0 = arith.constant 0 : index
    %c0_0 = arith.constant 0 : index
    %c0_1 = arith.constant 0 : index
    %0 = vector.load %arg6[%c0, %c0_0, %c0_1] : memref<1x8x1xf32, #tpu.memory_space<vmem>>, vector<1x8x1xf32>
    %1 = vector.shape_cast %0 : vector<1x8x1xf32> to vector<8x1xf32>
    %c0_2 = arith.constant 0 : index
    %c0_3 = arith.constant 0 : index
    %c0_4 = arith.constant 0 : index
    %2 = vector.load %arg3[%c0_2, %c0_3, %c0_4] : memref<1x8x128xf32, #tpu.memory_space<vmem>>, vector<1x8x128xf32>
    %3 = vector.shape_cast %2 : vector<1x8x128xf32> to vector<8x128xf32>
    %4 = vector.broadcast %1 : vector<8x1xf32> to vector<8x128xf32>
    %5 = arith.mulf %3, %4 : vector<8x128xf32>
    %c0_i32 = arith.constant 0 : i32
    %6 = arith.cmpi sgt, %arg1, %c0_i32 : i32
    %c0_5 = arith.constant 0 : index
    %c0_6 = arith.constant 0 : index
    %c0_7 = arith.constant 0 : index
    %7 = vector.load %arg4[%c0_5, %c0_6, %c0_7] : memref<1x8x128xf32, #tpu.memory_space<vmem>>, vector<1x8x128xf32>
    %8 = vector.shape_cast %7 : vector<1x8x128xf32> to vector<8x128xf32>
    %c0_8 = arith.constant 0 : index
    %c0_9 = arith.constant 0 : index
    %c0_10 = arith.constant 0 : index
    %9 = vector.load %arg7[%c0_8, %c0_9, %c0_10] : memref<1x8x1xf32, #tpu.memory_space<vmem>>, vector<1x8x1xf32>
    %10 = vector.shape_cast %9 : vector<1x8x1xf32> to vector<8x1xf32>
    %11 = vector.broadcast %10 : vector<8x1xf32> to vector<8x128xf32>
    %12 = arith.mulf %8, %11 : vector<8x128xf32>
    %cst = arith.constant 0.000000e+00 : f32
    %13 = vector.broadcast %cst : f32 to vector<8x128xf32>
    %14 = arith.select %6, %12, %13 : vector<8x128xf32>
    %c3_i32 = arith.constant 3 : i32
    %15 = arith.cmpi slt, %arg1, %c3_i32 : i32
    %c0_11 = arith.constant 0 : index
    %c0_12 = arith.constant 0 : index
    %c0_13 = arith.constant 0 : index
    %16 = vector.load %arg5[%c0_11, %c0_12, %c0_13] : memref<1x8x128xf32, #tpu.memory_space<vmem>>, vector<1x8x128xf32>
    %17 = vector.shape_cast %16 : vector<1x8x128xf32> to vector<8x128xf32>
    %c0_14 = arith.constant 0 : index
    %c0_15 = arith.constant 0 : index
    %c0_16 = arith.constant 0 : index
    %18 = vector.load %arg8[%c0_14, %c0_15, %c0_16] : memref<1x8x1xf32, #tpu.memory_space<vmem>>, vector<1x8x1xf32>
    %19 = vector.shape_cast %18 : vector<1x8x1xf32> to vector<8x1xf32>
    %20 = vector.broadcast %19 : vector<8x1xf32> to vector<8x128xf32>
    %21 = arith.mulf %17, %20 : vector<8x128xf32>
    %cst_17 = arith.constant 0.000000e+00 : f32
    %22 = vector.broadcast %cst_17 : f32 to vector<8x128xf32>
    %23 = arith.select %15, %21, %22 : vector<8x128xf32>
    %24 = tpu.concatenate %14, %5, %23 in 0 : vector<8x128xf32>, vector<8x128xf32>, vector<8x128xf32> -> vector<24x128xf32>
    %c0_18 = arith.constant 0 : index
    %c0_19 = arith.constant 0 : index
    %25 = vector.load %arg9[%c0_18, %c0_19] : memref<5x128xf32, #tpu.memory_space<vmem>>, vector<5x128xf32>
    %c0_20 = arith.constant 0 : index
    %c0_21 = arith.constant 0 : index
    %26 = vector.load %arg10[%c0_20, %c0_21] : memref<1x128xf32, #tpu.memory_space<vmem>>, vector<1x128xf32>
    %cst_22 = arith.constant 0.000000e+00 : f32
    %27 = vector.broadcast %cst_22 : f32 to vector<8x128xf32>
    %c18_i32 = arith.constant 18 : i32
    %28 = tpu.dynamic_rotate %24 by %c18_i32 dim 0 : vector<24x128xf32>, i32 -> vector<24x128xf32>
    %29 = vector.extract_strided_slice %28 {offsets = [0, 0], sizes = [8, 128], strides = [1, 1]} : vector<24x128xf32> to vector<8x128xf32>
    %30 = vector.extract_strided_slice %25 {offsets = [0, 0], sizes = [1, 128], strides = [1, 1]} : vector<5x128xf32> to vector<1x128xf32>
    %31 = vector.broadcast %30 : vector<1x128xf32> to vector<8x128xf32>
    %32 = arith.mulf %29, %31 : vector<8x128xf32>
    %33 = arith.addf %27, %32 : vector<8x128xf32>
    %c17_i32 = arith.constant 17 : i32
    %34 = tpu.dynamic_rotate %24 by %c17_i32 dim 0 : vector<24x128xf32>, i32 -> vector<24x128xf32>
    %35 = vector.extract_strided_slice %34 {offsets = [0, 0], sizes = [8, 128], strides = [1, 1]} : vector<24x128xf32> to vector<8x128xf32>
    %36 = vector.extract_strided_slice %25 {offsets = [1, 0], sizes = [1, 128], strides = [1, 1]} : vector<5x128xf32> to vector<1x128xf32>
    %37 = vector.broadcast %36 : vector<1x128xf32> to vector<8x128xf32>
    %38 = arith.mulf %35, %37 : vector<8x128xf32>
    %39 = arith.addf %33, %38 : vector<8x128xf32>
    %40 = vector.extract_strided_slice %24 {offsets = [8, 0], sizes = [8, 128], strides = [1, 1]} : vector<24x128xf32> to vector<8x128xf32>
    %41 = vector.extract_strided_slice %25 {offsets = [2, 0], sizes = [1, 128], strides = [1, 1]} : vector<5x128xf32> to vector<1x128xf32>
    %42 = vector.broadcast %41 : vector<1x128xf32> to vector<8x128xf32>
    %43 = arith.mulf %40, %42 : vector<8x128xf32>
    %44 = arith.addf %39, %43 : vector<8x128xf32>
    %c15_i32 = arith.constant 15 : i32
    %45 = tpu.dynamic_rotate %24 by %c15_i32 dim 0 : vector<24x128xf32>, i32 -> vector<24x128xf32>
    %46 = vector.extract_strided_slice %45 {offsets = [0, 0], sizes = [8, 128], strides = [1, 1]} : vector<24x128xf32> to vector<8x128xf32>
    %47 = vector.extract_strided_slice %25 {offsets = [3, 0], sizes = [1, 128], strides = [1, 1]} : vector<5x128xf32> to vector<1x128xf32>
    %48 = vector.broadcast %47 : vector<1x128xf32> to vector<8x128xf32>
    %49 = arith.mulf %46, %48 : vector<8x128xf32>
    %50 = arith.addf %44, %49 : vector<8x128xf32>
    %c14_i32 = arith.constant 14 : i32
    %51 = tpu.dynamic_rotate %24 by %c14_i32 dim 0 : vector<24x128xf32>, i32 -> vector<24x128xf32>
    %52 = vector.extract_strided_slice %51 {offsets = [0, 0], sizes = [8, 128], strides = [1, 1]} : vector<24x128xf32> to vector<8x128xf32>
    %53 = vector.extract_strided_slice %25 {offsets = [4, 0], sizes = [1, 128], strides = [1, 1]} : vector<5x128xf32> to vector<1x128xf32>
    %54 = vector.broadcast %53 : vector<1x128xf32> to vector<8x128xf32>
    %55 = arith.mulf %52, %54 : vector<8x128xf32>
    %56 = arith.addf %50, %55 : vector<8x128xf32>
    %57 = vector.broadcast %26 : vector<1x128xf32> to vector<8x128xf32>
    %58 = arith.addf %56, %57 : vector<8x128xf32>
    %cst_23 = arith.constant 5.000000e-01 : f32
    %59 = vector.broadcast %cst_23 : f32 to vector<8x128xf32>
    %60 = arith.mulf %59, %58 : vector<8x128xf32>
    %cst_24 = arith.constant 0.707106769 : f32
    %61 = vector.broadcast %cst_24 : f32 to vector<8x128xf32>
    %62 = arith.mulf %58, %61 : vector<8x128xf32>
    %63 = math.erf %62 : vector<8x128xf32>
    %cst_25 = arith.constant 1.000000e+00 : f32
    %64 = vector.broadcast %cst_25 : f32 to vector<8x128xf32>
    %65 = arith.addf %64, %63 : vector<8x128xf32>
    %66 = arith.mulf %60, %65 : vector<8x128xf32>
    %67 = vector.broadcast %1 : vector<8x1xf32> to vector<8x128xf32>
    %68 = arith.mulf %66, %67 : vector<8x128xf32>
    %c0_26 = arith.constant 0 : index
    %c0_27 = arith.constant 0 : index
    %c0_28 = arith.constant 0 : index
    %69 = vector.load %arg11[%c0_26, %c0_27, %c0_28] : memref<1x8x128xf32, #tpu.memory_space<vmem>>, vector<1x8x128xf32>
    %70 = vector.shape_cast %69 : vector<1x8x128xf32> to vector<8x128xf32>
    %71 = vector.shape_cast %68 : vector<8x128xf32> to vector<1x8x128xf32>
    tpu.vector_store %arg11[%c0_26, %c0_27, %c0_28], %71 {strides = array<i32>} : memref<1x8x128xf32, #tpu.memory_space<vmem>>, vector<1x8x128xf32>,
    return
  }
  func.func @transform_0(%arg0: i32, %arg1: i32, %arg2: i32) -> (i32, i32, i32) {
    %c0_i32 = arith.constant 0 : i32
    return %arg0, %arg1, %arg2 : i32, i32, i32
  }
  func.func @transform_1(%arg0: i32, %arg1: i32, %arg2: i32) -> (i32, i32, i32) {
    %c1_i32 = arith.constant 1 : i32
    %0 = arith.muli %arg1, %c1_i32 : i32
    %c1_i32_0 = arith.constant 1 : i32
    %1 = arith.subi %0, %c1_i32_0 : i32
    %c0_i32 = arith.constant 0 : i32
    %2 = arith.maxsi %1, %c0_i32 : i32
    %c0_i32_1 = arith.constant 0 : i32
    return %arg0, %2, %arg2 : i32, i32, i32
  }
  func.func @transform_2(%arg0: i32, %arg1: i32, %arg2: i32) -> (i32, i32, i32) {
    %c1_i32 = arith.constant 1 : i32
    %0 = arith.addi %arg1, %c1_i32 : i32
    %c1_i32_0 = arith.constant 1 : i32
    %1 = arith.muli %0, %c1_i32_0 : i32
    %c3_i32 = arith.constant 3 : i32
    %2 = arith.minsi %1, %c3_i32 : i32
    %c0_i32 = arith.constant 0 : i32
    return %arg0, %2, %arg2 : i32, i32, i32
  }
  func.func @transform_3(%arg0: i32, %arg1: i32, %arg2: i32) -> (i32, i32, i32) {
    %c0_i32 = arith.constant 0 : i32
    %c0_i32_0 = arith.constant 0 : i32
    return %arg0, %arg1, %c0_i32 : i32, i32, i32
  }
  func.func @transform_4(%arg0: i32, %arg1: i32, %arg2: i32) -> (i32, i32, i32) {
    %c1_i32 = arith.constant 1 : i32
    %0 = arith.muli %arg1, %c1_i32 : i32
    %c1_i32_0 = arith.constant 1 : i32
    %1 = arith.subi %0, %c1_i32_0 : i32
    %c0_i32 = arith.constant 0 : i32
    %2 = arith.maxsi %1, %c0_i32 : i32
    %c0_i32_1 = arith.constant 0 : i32
    %c0_i32_2 = arith.constant 0 : i32
    return %arg0, %2, %c0_i32_1 : i32, i32, i32
  }
  func.func @transform_5(%arg0: i32, %arg1: i32, %arg2: i32) -> (i32, i32, i32) {
    %c1_i32 = arith.constant 1 : i32
    %0 = arith.addi %arg1, %c1_i32 : i32
    %c1_i32_0 = arith.constant 1 : i32
    %1 = arith.muli %0, %c1_i32_0 : i32
    %c3_i32 = arith.constant 3 : i32
    %2 = arith.minsi %1, %c3_i32 : i32
    %c0_i32 = arith.constant 0 : i32
    %c0_i32_1 = arith.constant 0 : i32
    return %arg0, %2, %c0_i32 : i32, i32, i32
  }
  func.func @transform_6(%arg0: i32, %arg1: i32, %arg2: i32) -> (i32, i32) {
    %c0_i32 = arith.constant 0 : i32
    %c0_i32_0 = arith.constant 0 : i32
    return %c0_i32, %arg2 : i32, i32
  }
  func.func @transform_7(%arg0: i32, %arg1: i32, %arg2: i32) -> (i32, i32) {
    %c0_i32 = arith.constant 0 : i32
    %c0_i32_0 = arith.constant 0 : i32
    return %c0_i32, %arg2 : i32, i32
  }
  func.func @transform_8(%arg0: i32, %arg1: i32, %arg2: i32) -> (i32, i32, i32) {
    %c0_i32 = arith.constant 0 : i32
    return %arg0, %arg1, %arg2 : i32, i32, i32
  }
}

</mosaic_0001>

<bundles_post_ra>
// kernel: tpu_custom_call.1
= control target key start
LH: loop header
LB: loop body
LE: loop exit
PB: predicated region body
PF: predicated region fallthrough
CT: control target
= control target key end

     0   :  { %13 = vsyncpa [#allocation3], 0  ;;  %s1409_s0 = inlined_call_operand.vmem [shape: f32[2,32,128], index: 0, kind: input, shape index: {}]   ;;  %s1410_s1 = inlined_call_operand.vmem [shape: f32[2,32,128], index: 1, kind: input, shape index: {}]   ;;  %s1411_s2 = inlined_call_operand.vmem [shape: f32[2,32,128], index: 2, kind: input, shape index: {}]   ;;  %s1412_s3 = inlined_call_operand.vmem [shape: f32[2,32,1], index: 3, kind: input, shape index: {}]   ;;  %s1413_s4 = inlined_call_operand.vmem [shape: f32[2,32,1], index: 4, kind: input, shape index: {}]   ;;  %s1414_s5 = inlined_call_operand.vmem [shape: f32[2,32,1], index: 5, kind: input, shape index: {}]   ;;  %s1415_s6 = inlined_call_operand.vmem [shape: f32[5,128], index: 6, kind: input, shape index: {}]   ;;  %s1416_s7 = inlined_call_operand.vmem [shape: f32[1,128], index: 7, kind: input, shape index: {}]   ;;  %s1417_s8 = inlined_call_operand.hbm [shape: f32[2,32,128], index: 8, kind: output, shape index: {}]  }
   0x1   :  { %15 = vsyncpa [#allocation3 + $0x1], 0  ;;  %s1235_s27 = smov 0   ;;  %s1237_s28 = smov 0  }
   0x2   :  { %s1239_s29 = smov 0   ;;  %s1241_s30 = smov 0  }
   0x3   :  { %s1243_s9 = smov 0   ;;  %s1245_s10 = smov 0  }
   0x4   :  { %s1247_s11 = smov 0   ;;  %s1249_s12 = smov 0  }
   0x5 LB: > { %1424 = sst [smem:[#allocation5_spill]] %s1166_s29  ;;  %s964_s13 = sadd.s32 4294967295, %s1186_s12   ;;  %s1186_s12 = sphi %s1249_s12, %s21_s12   ;;  %s1182_s11 = sphi %s1247_s11, %s1441_s11   ;;  %s1178_s10 = sphi %s1245_s10, %s1440_s10   ;;  %s1174_s9 = sphi %s1243_s9, %s1439_s9   ;;  %s1170_s30 = sphi %s1241_s30, %s1438_s30   ;;  %s1166_s29 = sphi %s1239_s29, %s1437_s29   ;;  %s1162_s28 = sphi %s1237_s28, %s1443_s28   ;;  %s1158_s27 = sphi %s1235_s27, %s1442_s27  }
   0x6   : > { %1425 = sst [smem:[#allocation6_spill]] %s1178_s10  ;;  %s965_s14 = sadd.s32 4294967294, %s1186_s12  }
   0x7   : > { %1426 = sst [smem:[#allocation7_spill]] %s1182_s11  ;;  %s36_s15 = sadd.s32 1, %s1178_s10 }
   0x8   : > { %p38_p0 = scmp.ge.s32.totalorder %s36_s15, 4  ;;  %s40_s16 = sadd.s32 1, %s1182_s11 }
   0x9   : > { %p311_p1 = scmp.ne.s32.totalorder %s1166_s29, %s1162_s28  ;;  %p312_p2 = scmp.eq.s32.totalorder %s964_s13, 7 }
   0xa   : > { %s1445_s15 = smov (%p38_p0, %s36_s15), 0  ;;  %s1447_s16 = smov (!%p38_p0, %s40_s16), %s1182_s11 }
   0xb   : > { %1427 = sst [smem:[#allocation8_spill]] %s1445_s15  ;;  %s295_s17 = ssub.s32 %s1178_s10, %s1445_s15 }
   0xc   : > { %p1286_p3 = por %p312_p2, %p311_p1  ;;  %p42_p4 = scmp.ge.s32.totalorder %s1447_s16, 2 }
   0xd   : > { %p317_p5 = scmp.ne.s32.totalorder %s1162_s28, %s1158_s27  ;;  %p318_p6 = scmp.eq.s32.totalorder %s965_s14, 7 }
   0xe   : > { %p974_p7 = scmp.ge.s32.totalorder %s1186_s12, 1  ;;  %s1449_s16 = smov (%p42_p4, %s1447_s16), 0 }
   0xf   : > { %1429 = sst [smem:[#allocation9_spill]] %s1449_s16  ;;  %p1295_p8 = por %p318_p6, %p317_p5 }
  0x10   : > { %p448_p9 = scmp.lt.s32.totalorder %s1186_s12, 9  ;;  %s294_s20 = ssub.s32 %s1182_s11, %s1449_s16 }
  0x11   : > { %s1430_s19 = scalar_select %p1295_p8, 1, 0 }
  0x12   : > { %s301_s21 = sadd.s32 1, %s1166_s29  ;;  %s296_s22 = sor.u32 %s295_s17, %s294_s20 }
  0x13   : > { %1431 = sst [smem:[#allocation10_spill]] %s1430_s19  ;;  %p449_p10 = pnand %p974_p7, %p448_p9 }
  0x14   : > { %p299_p11 = scmp.eq.s32.totalorder %s296_s22, 0  ;;  %p553_p12 = scmp.lt.s32.totalorder (!%p449_p10), %s1174_s9, 1  ;;  %v1188_v0 = vmov (!%p449_p10), 0   ;;  %v679_v4 = vlaneseq (!%p449_p10)  ;;  %v675_v12 = vld [vmem:[%s1415_s6] sm:$0x1f] (!%p449_p10) }
  0x15   : > { %452 = sbr.rel (%p449_p10) target bundleno = 218 (0xda), region = 52  ;;  %s978_s24 = sadd.s32 (!%p449_p10), 4294967295, %s1170_s30  ;;  %1088 = vset.pattern.permute.xlu0 (!%p449_p10), %v1188_v0  ;;  %1089 = vset.pattern.permute.xlu1 (!%p449_p10), %v1188_v0  ;;  %v1006_v51 = vld [vmem:[%s1416_s7] ss:$0 sm:$0xff] (!%p449_p10) }
  0x16   : > { %s1304_s23 = scalar_select %p299_p11, %s1166_s29, %s301_s21  }
  0x17   : > { %p565_p13 = scmp.gt.s32.totalorder (!%p449_p10), %s978_s24, 0  ;;  %p979_p0 = scmp.lt.s32.totalorder (!%p449_p10), %s978_s24, 3  ;;  %v680_v6 = vshrl.u32 (!%p449_p10), %v679_v4, 7 }
  0x18   : > { %1432 = sst [smem:[#allocation11_spill]] %s1304_s23  ;;  %s581_s13 = sadd.s32 (!%p449_p10), 1, %s1170_s30 }
  0x19   : > { %p582_p1 = scmp.lt.s32.totalorder (!%p449_p10), %s581_s13, 3  ;;  %p555_p2 = scmp.lt.s32.totalorder (!%p449_p10), %s1170_s30, 3  ;;  %v701_v10 = vsub.s32 (!%p449_p10), 2, %v680_v6  ;;  %v685_v13 = vsub.s32 (!%p449_p10), 0, %v680_v6  ;;  %v695_v14 = vsub.s32 (!%p449_p10), 1, %v680_v6  ;;  %vm681_vm2 = vcmp.lt.s32.totalorder (!%p449_p10), %v680_v6, 2 }
  0x1a   : > { %p649_p4 = scmp.gt.s32.totalorder (!%p449_p10), %s1170_s30, 0  ;;  %vm691_vm3 = vcmp.lt.s32.totalorder (!%p449_p10), %v680_v6, 1  ;;  %vm707_vm4 = vcmp.lt.s32.totalorder (!%p449_p10), %v680_v6, 7  ;;  %v711_v27 = vsub.s32 (!%p449_p10), 3, %v680_v6  ;;  %vm717_vm5 = vcmp.lt.s32.totalorder (!%p449_p10), %v680_v6, 6 }
  0x1b   : > { %v702_v19 = vrot.slane (!%p449_p10), %v675_v12, %v701_v10  ;;  %v686_v22 = vrot.slane (!%p449_p10), %v675_v12, %v685_v13  ;;  %v696_v26 = vrot.slane (!%p449_p10), %v675_v12, %v695_v14  ;;  %v721_v33 = vsub.s32 (!%p449_p10), 4, %v680_v6 }
  0x1c   : > { %s554_s25 = scalar_select %p553_p12, %s1174_s9, 1  ;;  %v712_v39 = vrot.slane %v675_v12, %v711_v27 }
  0x1d   : > { %s1451_s24 = smov (!%p565_p13, %s978_s24), 0  ;;  %s1455_s13 = smov (!%p582_p1, %s581_s13), 3  ;;  %v722_v44 = vrot.slane %v675_v12, %v721_v33 }
  0x1e   : > { %s976_s26 = sshll.u32 %s554_s25, 2  ;;  %s1453_s24 = smov (!%p979_p0, %s1451_s24), 3 }
  0x1f   : > { %s575_s14 = sadd.s32 %s1453_s24, %s976_s26  ;;  %s1457_s13 = smov (!%p582_p1, %s1455_s13), 3 }
  0x20   : > { %s985_s17 = sshll.u32 %s575_s14, 3  ;;  %s592_s11 = sadd.s32 %s976_s26, %s1457_s13 }
  0x21   : > { %s616_s22 = scalar_lea.vmem %s1413_s4, %s985_s17  ;;  %s990_s10 = sshll.u32 %s592_s11, 3 }
  0x22   : > { %v651_v1 = vld [vmem:[%s616_s22] sm:$0xff]  ;;  %s556_s16 = scalar_select %p555_p2, %s1170_s30, 3 }
  0x23   : > { %654 = vperm.xlu0 %1088, %v651_v1   ;;  %s630_s20 = scalar_lea.vmem %s1414_s5, %s990_s10  ;;  %s594_s24 = scalar_lea.vmem %s1411_s2, %s990_s10 }
  0x24   : > { %s561_s15 = sadd.s32 %s976_s26, %s556_s16  ;;  %v664_v3 = vld [vmem:[%s630_s20] sm:$0xff]  ;;  %s577_s16 = scalar_lea.vmem %s1410_s1, %s985_s17 }
  0x25   : > { %s977_s25 = sshll.u32 %s561_s15, 3  ;;  %667 = vperm.xlu1 %1089, %v664_v3   ;;  %v650_v5 = vld [vmem:[%s577_s16] sm:$0xff]  ;;  %s550_s20 = sand.u32 1, %s1162_s28  }
  0x26   : > { %s605_s14 = scalar_lea.vmem %s1412_s3, %s977_s25  ;;  %s563_s23 = scalar_lea.vmem %s1409_s0, %s977_s25  ;;  %v663_v17 = vld [vmem:[%s594_s24] sm:$0xff] }
  0x27   : > { %v641_v2 = vld [vmem:[%s605_s14] sm:$0xff]  ;;  %s658_s15 = scalar_select %p649_p4, 1, 0 }
  0x28   : > { %645 = vperm.xlu0 %1088, %v641_v2   ;;  %s671_s11 = scalar_select %p555_p2, 1, 0  ;;  %v642_v15 = vld [vmem:[%s563_s23] sm:$0xff] }
  0x29   : > { %v659_v7 = vstv %s658_s15  ;;  %s975_s21 = sshll.u32 %s550_s20, 3  ;;  %s1008_s22 = sshll.u32 %s1174_s9, 2 }
  0x2a   : > { %vm660_vm0 = vcmp.eq.s32.totalorder %v659_v7, 1  ;;  %v672_v11 = vstv %s671_s11  ;;  %s752_s16 = sadd.s32 %s1170_s30, %s1008_s22  ;;  %s552_s11 = scalar_lea.vmem [#allocation2], %s975_s21 }
  0x2b   : > { %vm1338_vm1 = vcmp.eq.s32.totalorder %v672_v11, 1  ;;  %s1009_s15 = sshll.u32 %s752_s16, 7  ;;  %s756_s29 = sshll.u32 %s552_s11, 4  ;;  %s1358_s29 = int_to_ptr.vmem [resolvable:$true] %s756_s29 }
  0x2c   : > { %s1356_s26 = scalar_lea.hbm %s1417_s8, %s1009_s15  ;;  %s740_s30 = scalar_lea.sflag [#allocation3], %s550_s20 }
  0x2d   : > { %s1092_s9 = scalar_lea.vmem %s1358_s29, 128  ;;  %s1189_s13 = smov [#allocation2]  }
  0x2e   : > { %p1093_p5 = scmp.ne.s32.totalorder %s1358_s29, %s1092_s9  ;;  %s1096_s24 = sshll.u32 %s1189_s13, 4  ;;  %s1097_s24 = int_to_ptr.vmem [resolvable:$false] %s1096_s24 }
  0x2f   : > { %s1098_s17 = scalar_lea.vmem %s1097_s24, 256  ;;  %p1099_p9 = scmp.lt.s32.totalorder %s1358_s29, %s1097_s24 }
  0x30   : > { %p1094_p6 = pnand %p1093_p5, %p1286_p3  ;;  %p1100_p10 = scmp.lt.s32.totalorder %s1098_s17, %s1092_s9 }
  0x32   : > { %p1095_p7 = pneg %p1094_p6  ;;  %p1101_p11 = por %p1100_p10, %p1099_p9 }
  0x34   : > { %p1102_p12 = pnand %p1101_p11, %p1095_p7 }
  0xa2   : > { %v655_v8 = vpop.permute.xlu0 %654 }
  0xa3   : > { %v657_v9 = vmul.f32 %v655_v8, %v650_v5 }
  0xa4   : > { %v668_v21 = vpop.permute.xlu1 %667 }
  0xa5   : > { %v661_v16 = vsel %vm660_vm0, %v657_v9, 0.0  ;;  %v670_v25 = vmul.f32 %v668_v21, %v663_v17 }
  0xa6   : > { %v677_v24 = vrot.slane %v661_v16, 6  ;;  %v689_v28 = vrot.slane %v661_v16, 7 }
  0xa7   : > { %v646_v20 = vpop.permute.xlu0 %645  ;;  %v674_v32 = vsel %vm1338_vm1, %v670_v25, 0.0 }
  0xa8   : > { %v648_v23 = vmul.f32 %v646_v20, %v642_v15  ;;  %v706_v35 = vrot.slane %v674_v32, 1  ;;  %v716_v36 = vrot.slane %v674_v32, 2 }
  0xaa   : > { %v678_v29 = vrot.slane %v648_v23, 6  ;;  %v690_v30 = vrot.slane %v648_v23, 7  ;;  %v705_v31 = vrot.slane %v648_v23, 1  ;;  %v715_v34 = vrot.slane %v648_v23, 2 }
  0xab   : > { %v703_v46 = vmul.f32 %v702_v19, %v648_v23 }
  0xac   : > { %v682_v37 = vsel %vm681_vm2, %v677_v24, %v678_v29  ;;  %v692_v38 = vsel %vm691_vm3, %v689_v28, %v690_v30  ;;  %v708_v42 = vsel %vm707_vm4, %v705_v31, %v706_v35  ;;  %v718_v43 = vsel %vm717_vm5, %v715_v34, %v716_v36 }
  0xad   : > { %v687_v40 = vmul.f32 %v686_v22, %v682_v37  ;;  %v697_v41 = vmul.f32 %v696_v26, %v692_v38  ;;  %v713_v48 = vmul.f32 %v712_v39, %v708_v42  ;;  %v723_v50 = vmul.f32 %v722_v44, %v718_v43 }
  0xaf   : > { %v698_v45 = vadd.f32 %v697_v41, %v687_v40 }
  0xb1   : > { %v704_v47 = vadd.f32 %v703_v46, %v698_v45 }
  0xb3   : > { %v714_v49 = vadd.f32 %v713_v48, %v704_v47 }
  0xb5   : > { %v724_v52 = vadd.f32 %v723_v50, %v714_v49 }
  0xb7   : > { %v731_v53 = vadd.f32 %v1006_v51, %v724_v52 }
  0xb9   : > { %v733_v54 = vmul.f32 0.70710677, %v731_v53  ;;  %v732_v56 = vmul.f32 0.5, %v731_v53 }
  0xbb   : > { %1090 = verf.f32 %v733_v54 }
  0xc5   : > { %v1091_v55 = vpop.eup %1090 }
  0xc6   : > { %v735_v57 = vadd.f32 1.0, %v1091_v55 }
  0xc8   : > { %v736_v58 = vmul.f32 %v735_v57, %v732_v56 }
  0xca   : > { %v737_v59 = vmul.f32 %v736_v58, %v646_v20 }
  0xcc   : > { %738 = vst [vmem:[%s552_s11] sm:$0xff] %v737_v59 }
  0xcd   : > { %1105 = shalt.err (!%p1102_p12)
}
  0xce   : > { %s1106_s14 = scalar_lea.hbm %s1356_s26, 128  ;;  %s1110_s20 = scalar_lea.hbm %s1417_s8, 1024 }
  0xcf   : > { %p1107_p13 = scmp.ne.s32.totalorder %s1356_s26, %s1106_s14  ;;  %p1111_p2 = scmp.lt.u32.totalorder %s1356_s26, %s1417_s8 }
  0xd0   : > { %p1112_p4 = scmp.lt.u32.totalorder %s1110_s20, %s1106_s14  ;;  %p1114_p6 = scmp.lt.u32.totalorder %s1106_s14, %s1356_s26 }
  0xd1   : > { %p1108_p0 = pnand %p1107_p13, %p1286_p3 }
  0xd2   : > { %p1113_p5 = por %p1112_p4, %p1111_p2 }
  0xd3   : > { %p1109_p1 = pneg %p1108_p0 }
  0xd4   : > { %p1115_p7 = por %p1114_p6, %p1113_p5 }
  0xd6   : > { %p1116_p9 = pnand %p1115_p7, %p1109_p1 }
  0xd8   : > { %1119 = shalt.err (!%p1116_p9)
}
  0xd9   : > { %1016 = dma.vmem_to_hbm [thread:$0]  (%p1286_p3), %s1358_s29, 128, %s1356_s26, %s740_s30  }
  0xda PF: > { %p1022_p10 = scmp.ge.s32.totalorder %s1186_s12, 2  ;;  %s768_s15 = sand.u32 1, %s1158_s27  }
  0xdb   : > { %s769_s11 = scalar_lea.sflag [#allocation3], %s768_s15 }
  0xdc   : > { %p1019_p11 = pnand %p1022_p10, %p1295_p8 }
  0xde   : > { %1153 = dma.done.wait (!%p1019_p11), %s769_s11, 128  }
  0xdf   : > { %1155 = vsyncadd (!%p1019_p11), %s769_s11, 4294967168  ;;  %s21_s12 = sadd.s32 1, %s1186_s12   ;;  %s1436_s19 = sld [smem:[#allocation5_spill]] }
  0xe0   : > { %p18_p12 = scmp.ge.s32.totalorder %s21_s12, 10   ;;  %s1437_s29 = sld [smem:[#allocation11_spill]] }
  0xe1   : > { %s1438_s30 = sld [smem:[#allocation6_spill]]  ;;  %s1439_s9 = sld [smem:[#allocation7_spill]] }
  0xe2   : > { %s1440_s10 = sld [smem:[#allocation8_spill]]  ;;  %s1441_s11 = sld [smem:[#allocation9_spill]] }
  0xe3   : > { %s1442_s27 = smov %s1162_s28  ;;  %20 = sbr.rel (!%p18_p12) target bundleno = 5 (0x5), region = 108 }
  0xe5   : > { %s1443_s28 = smov %s1436_s19 }
  0xea   :  { %774 = vsyncpa [#allocation3], 1 }
  0xeb   :  { %776 = vsyncpa [#allocation3 + $0x1], 1 }

</bundles_post_ra>
